<compile_context>
chip_gen: v5e
topology: v5e:2x2
jax: 0.10.0
libtpu: 0.0.40
codegen_flags: <defaults>
</compile_context>

<pallas_src>
import functools

import jax
import jax.numpy as jnp
from jax.experimental import pallas as pl
from jax.experimental.pallas import tpu as pltpu

BN_EPS = 1e-5


def _cell_kernel(x_ref,
                 wp_ref, sp_ref, bp_ref,     # preprocess  (C, C_prev), (C,1), (C,1)
                 w01_ref, s01_ref, b01_ref,  # merged ops[0]+ops[1]  (2C, C), (2C,1), (2C,1)
                 w3_ref, s3_ref, b3_ref,     # ops[3]      (C, C), (C,1), (C,1)
                 out_ref):                   # (3C, t_hw)
    """One (image, spatial-tile) block of the whole cell: 4 fused
    ReLU->1x1conv->BN (two merged into one matmul) + skip adds + concat."""
    C = w3_ref.shape[0]
    x = x_ref[...]                                            # (C_prev, t_hw)

    def relu_conv_bn(h, w_ref, scale_ref, bias_ref):
        y = jnp.dot(w_ref[...], jnp.maximum(h, 0.0),
                    preferred_element_type=jnp.float32)       # (C_out, t_hw)
        # BN eval mode (mean=0, var=1) folded into per-channel scale/bias.
        return y * scale_ref[...] + bias_ref[...]

    s0 = relu_conv_bn(x, wp_ref, sp_ref, bp_ref)              # preprocess -> (C, t_hw)
    s12 = relu_conv_bn(s0, w01_ref, s01_ref, b01_ref)         # ops[0] & ops[1] in one dot
    s1 = s12[:C, :]                                           # ops[0](s0)
    s2 = s12[C:, :] + s0                                      # ops[1](s0) + skip(s0)
    s3 = relu_conv_bn(s1, w3_ref, s3_ref, b3_ref) + s2        # ops[3](s1) + skip(s2)

    # concat([s1, s2, s3], channel dim) as three aligned sublane sub-blocks.
    out_ref[0:C, :] = s1
    out_ref[C:2 * C, :] = s2
    out_ref[2 * C:3 * C, :] = s3


@functools.partial(jax.jit, static_argnames=("t_hw",))
def cell_forward(x_nchw, params, *, t_hw=2048):
    """x_nchw: (N, C_prev, H, W) float32 -> (N, 3*C, H, W) float32."""
    N, C_prev, H, W = x_nchw.shape
    C = params["w_pre"].shape[1]
    HW = H * W
    t_hw = min(t_hw, HW)                      # static ints at trace time
    assert HW % t_hw == 0 and (t_hw % 128 == 0 or t_hw == HW), (HW, t_hw)

    # NCHW-native: free reshape, no transposes.
    x = x_nchw.reshape(N, C_prev, HW)

    # Transpose weights to (C_out, C_in); scale/bias as (C_out, 1) columns.
    def prep(tag):
        w_t = params[f"w_{tag}"].T
        s = params[f"scale_{tag}"].reshape(-1, 1)
        b = params[f"bias_{tag}"].reshape(-1, 1)
        return w_t, s, b

    wp, sp, bp = prep("pre")
    w0, sc0, b0 = prep("op0")
    w1, sc1, b1 = prep("op1")
    w3, sc3, b3 = prep("op3")
    # Merge ops[0] / ops[1] along the output-channel axis (same input relu(s0)).
    w01 = jnp.concatenate([w0, w1], axis=0)    # (2C, C)
    s01 = jnp.concatenate([sc0, sc1], axis=0)  # (2C, 1)
    b01 = jnp.concatenate([b0, b1], axis=0)    # (2C, 1)

    def tile_spec(c):
        # channels on sublane, spatial tile on lane (lane-dense, unmasked stores)
        return pl.BlockSpec((pl.Squeezed(), c, t_hw), lambda n, j: (n, 0, j))

    def const_spec(arr):
        # full array, constant index -> fetched once, stays VMEM-resident
        return pl.BlockSpec(arr.shape, lambda n, j: (0, 0))

    grid = (N, HW // t_hw)
    out = pl.pallas_call(
        _cell_kernel,
        out_shape=jax.ShapeDtypeStruct((N, 3 * C, HW), jnp.float32),
        grid_spec=pl.GridSpec(
            grid=grid,
            in_specs=[tile_spec(C_prev),
                      const_spec(wp), const_spec(sp), const_spec(bp),
                      const_spec(w01), const_spec(s01), const_spec(b01),
                      const_spec(w3), const_spec(sc3), const_spec(b3)],
            out_specs=tile_spec(3 * C),
        ),
        compiler_params=pltpu.CompilerParams(
            dimension_semantics=("parallel", "parallel")),
    )(x, wp, sp, bp, w01, s01, b01, w3, sc3, b3)

    return out.reshape(N, 3 * C, H, W)


def make_params(key, C_prev, C):
    """Deterministic parameter init. BN: running stats (0, 1), affine gamma/beta."""
    keys = jax.random.split(key, 12)
    p = {}
    specs = [("pre", C_prev), ("op0", C), ("op1", C), ("op3", C)]
    for i, (tag, cin) in enumerate(specs):
        w = jax.random.normal(keys[3 * i], (cin, C), jnp.float32) * 0.2
        gamma = 1.0 + 0.1 * jax.random.normal(keys[3 * i + 1], (1, C), jnp.float32)
        beta = 0.1 * jax.random.normal(keys[3 * i + 2], (1, C), jnp.float32)
        p[f"w_{tag}"] = w
        # Fold BN eval-mode normalization (mean=0, var=1) into scale/bias.
        p[f"scale_{tag}"] = gamma / jnp.sqrt(1.0 + BN_EPS)
        p[f"bias_{tag}"] = beta
    return p


def cell_reference(x_nchw, params):
    """Pure-JAX reference of the same forward pass (for correctness check)."""
    N, C_prev, H, W = x_nchw.shape
    C = params["w_pre"].shape[1]
    x = jnp.transpose(x_nchw, (0, 2, 3, 1)).reshape(-1, C_prev)

    def rcb(h, tag):
        return (jnp.maximum(h, 0.0) @ params[f"w_{tag}"]) * params[f"scale_{tag}"] \
               + params[f"bias_{tag}"]

    s0 = rcb(x, "pre")
    s1 = rcb(s0, "op0")
    s2 = rcb(s0, "op1") + s0
    s3 = rcb(s1, "op3") + s2
    out = jnp.concatenate([s1, s2, s3], axis=-1).reshape(N, H, W, 3 * C)
    return jnp.transpose(out, (0, 3, 1, 2))


if __name__ == "__main__":
    key = jax.random.PRNGKey(0)
    k_x, k_p = jax.random.split(key)

    N, C_prev, C, H, W = 2, 4, 8, 16, 16
    x = jax.random.normal(k_x, (N, C_prev, H, W), jnp.float32)
    params = make_params(k_p, C_prev, C)

    out = cell_forward(x, params)
    out = jax.block_until_ready(out)

    ref = cell_reference(x, params)
    assert out.shape == (N, 3 * C, H, W), out.shape
    assert jnp.allclose(out, ref, atol=1e-5, rtol=1e-5), \
        float(jnp.max(jnp.abs(out - ref)))

    print("KERNEL_OK")
</pallas_src>

<mosaic_0001>
module attributes {stable_mosaic.version = 11 : i64} {
  func.func @_cell_kernel(%arg0: i32, %arg1: i32, %arg2: memref<1x4x256xf32, #tpu.memory_space<vmem>>, %arg3: memref<8x4xf32, #tpu.memory_space<vmem>>, %arg4: memref<8x1xf32, #tpu.memory_space<vmem>>, %arg5: memref<8x1xf32, #tpu.memory_space<vmem>>, %arg6: memref<16x8xf32, #tpu.memory_space<vmem>>, %arg7: memref<16x1xf32, #tpu.memory_space<vmem>>, %arg8: memref<16x1xf32, #tpu.memory_space<vmem>>, %arg9: memref<8x8xf32, #tpu.memory_space<vmem>>, %arg10: memref<8x1xf32, #tpu.memory_space<vmem>>, %arg11: memref<8x1xf32, #tpu.memory_space<vmem>>, %arg12: memref<1x24x256xf32, #tpu.memory_space<vmem>>) attributes {dimension_semantics = [#tpu.dimension_semantics<parallel>, #tpu.dimension_semantics<parallel>], iteration_bounds = array<i64: 2, 1>, scalar_prefetch = 0 : i64, scratch_operands = 0 : i64, tpu.core_type = #tpu.core_type<tc>, window_params = [{transform_indices = @transform_0, window_bounds = array<i64: 1, 4, 256>}, {pipeline_mode = #tpu.pipeline_mode<synchronous>, transform_indices = @transform_1, window_bounds = array<i64: 8, 4>}, {pipeline_mode = #tpu.pipeline_mode<synchronous>, transform_indices = @transform_2, window_bounds = array<i64: 8, 1>}, {pipeline_mode = #tpu.pipeline_mode<synchronous>, transform_indices = @transform_3, window_bounds = array<i64: 8, 1>}, {pipeline_mode = #tpu.pipeline_mode<synchronous>, transform_indices = @transform_4, window_bounds = array<i64: 16, 8>}, {pipeline_mode = #tpu.pipeline_mode<synchronous>, transform_indices = @transform_5, window_bounds = array<i64: 16, 1>}, {pipeline_mode = #tpu.pipeline_mode<synchronous>, transform_indices = @transform_6, window_bounds = array<i64: 16, 1>}, {pipeline_mode = #tpu.pipeline_mode<synchronous>, transform_indices = @transform_7, window_bounds = array<i64: 8, 8>}, {pipeline_mode = #tpu.pipeline_mode<synchronous>, transform_indices = @transform_8, window_bounds = array<i64: 8, 1>}, {pipeline_mode = #tpu.pipeline_mode<synchronous>, transform_indices = @transform_9, window_bounds = array<i64: 8, 1>}, {transform_indices = @transform_10, window_bounds = array<i64: 1, 24, 256>}]} {
    %c0 = arith.constant 0 : index
    %c0_0 = arith.constant 0 : index
    %c0_1 = arith.constant 0 : index
    %0 = vector.load %arg2[%c0, %c0_0, %c0_1] : memref<1x4x256xf32, #tpu.memory_space<vmem>>, vector<1x4x256xf32>
    %1 = vector.shape_cast %0 : vector<1x4x256xf32> to vector<4x256xf32>
    %c0_2 = arith.constant 0 : index
    %c0_3 = arith.constant 0 : index
    %2 = vector.load %arg3[%c0_2, %c0_3] : memref<8x4xf32, #tpu.memory_space<vmem>>, vector<8x4xf32>
    %cst = arith.constant 0.000000e+00 : f32
    %3 = vector.broadcast %cst : f32 to vector<4x256xf32>
    %4 = arith.maximumf %1, %3 : vector<4x256xf32>
    %cst_4 = arith.constant dense<0.000000e+00> : vector<8x256xf32>
    %5 = tpu.matmul %2, %4, %cst_4 {dimension_numbers = #tpu.dot_dimension_numbers<[1], [0], [0], [1], [0, 0, 1, 1], [], []>} : vector<8x4xf32>, vector<4x256xf32>, vector<8x256xf32> -> vector<8x256xf32>
    %c0_5 = arith.constant 0 : index
    %c0_6 = arith.constant 0 : index
    %6 = vector.load %arg4[%c0_5, %c0_6] : memref<8x1xf32, #tpu.memory_space<vmem>>, vector<8x1xf32>
    %7 = vector.broadcast %6 : vector<8x1xf32> to vector<8x256xf32>
    %8 = arith.mulf %5, %7 : vector<8x256xf32>
    %c0_7 = arith.constant 0 : index
    %c0_8 = arith.constant 0 : index
    %9 = vector.load %arg5[%c0_7, %c0_8] : memref<8x1xf32, #tpu.memory_space<vmem>>, vector<8x1xf32>
    %10 = vector.broadcast %9 : vector<8x1xf32> to vector<8x256xf32>
    %11 = arith.addf %8, %10 : vector<8x256xf32>
    %c0_9 = arith.constant 0 : index
    %c0_10 = arith.constant 0 : index
    %12 = vector.load %arg6[%c0_9, %c0_10] : memref<16x8xf32, #tpu.memory_space<vmem>>, vector<16x8xf32>
    %cst_11 = arith.constant 0.000000e+00 : f32
    %13 = vector.broadcast %cst_11 : f32 to vector<8x256xf32>
    %14 = arith.maximumf %11, %13 : vector<8x256xf32>
    %cst_12 = arith.constant dense<0.000000e+00> : vector<16x256xf32>
    %15 = tpu.matmul %12, %14, %cst_12 {dimension_numbers = #tpu.dot_dimension_numbers<[1], [0], [0], [1], [0, 0, 1, 1], [], []>} : vector<16x8xf32>, vector<8x256xf32>, vector<16x256xf32> -> vector<16x256xf32>
    %c0_13 = arith.constant 0 : index
    %c0_14 = arith.constant 0 : index
    %16 = vector.load %arg7[%c0_13, %c0_14] : memref<16x1xf32, #tpu.memory_space<vmem>>, vector<16x1xf32>
    %17 = vector.broadcast %16 : vector<16x1xf32> to vector<16x256xf32>
    %18 = arith.mulf %15, %17 : vector<16x256xf32>
    %c0_15 = arith.constant 0 : index
    %c0_16 = arith.constant 0 : index
    %19 = vector.load %arg8[%c0_15, %c0_16] : memref<16x1xf32, #tpu.memory_space<vmem>>, vector<16x1xf32>
    %20 = vector.broadcast %19 : vector<16x1xf32> to vector<16x256xf32>
    %21 = arith.addf %18, %20 : vector<16x256xf32>
    %22 = vector.extract_strided_slice %21 {offsets = [0, 0], sizes = [8, 256], strides = [1, 1]} : vector<16x256xf32> to vector<8x256xf32>
    %23 = vector.extract_strided_slice %21 {offsets = [8, 0], sizes = [8, 256], strides = [1, 1]} : vector<16x256xf32> to vector<8x256xf32>
    %24 = arith.addf %23, %11 : vector<8x256xf32>
    %c0_17 = arith.constant 0 : index
    %c0_18 = arith.constant 0 : index
    %25 = vector.load %arg9[%c0_17, %c0_18] : memref<8x8xf32, #tpu.memory_space<vmem>>, vector<8x8xf32>
    %cst_19 = arith.constant 0.000000e+00 : f32
    %26 = vector.broadcast %cst_19 : f32 to vector<8x256xf32>
    %27 = arith.maximumf %22, %26 : vector<8x256xf32>
    %cst_20 = arith.constant dense<0.000000e+00> : vector<8x256xf32>
    %28 = tpu.matmul %25, %27, %cst_20 {dimension_numbers = #tpu.dot_dimension_numbers<[1], [0], [0], [1], [0, 0, 1, 1], [], []>} : vector<8x8xf32>, vector<8x256xf32>, vector<8x256xf32> -> vector<8x256xf32>
    %c0_21 = arith.constant 0 : index
    %c0_22 = arith.constant 0 : index
    %29 = vector.load %arg10[%c0_21, %c0_22] : memref<8x1xf32, #tpu.memory_space<vmem>>, vector<8x1xf32>
    %30 = vector.broadcast %29 : vector<8x1xf32> to vector<8x256xf32>
    %31 = arith.mulf %28, %30 : vector<8x256xf32>
    %c0_23 = arith.constant 0 : index
    %c0_24 = arith.constant 0 : index
    %32 = vector.load %arg11[%c0_23, %c0_24] : memref<8x1xf32, #tpu.memory_space<vmem>>, vector<8x1xf32>
    %33 = vector.broadcast %32 : vector<8x1xf32> to vector<8x256xf32>
    %34 = arith.addf %31, %33 : vector<8x256xf32>
    %35 = arith.addf %34, %24 : vector<8x256xf32>
    %c0_25 = arith.constant 0 : index
    %c0_26 = arith.constant 0 : index
    %c0_27 = arith.constant 0 : index
    %36 = vector.load %arg12[%c0_25, %c0_26, %c0_27] : memref<1x24x256xf32, #tpu.memory_space<vmem>>, vector<1x8x256xf32>
    %37 = vector.shape_cast %36 : vector<1x8x256xf32> to vector<8x256xf32>
    %38 = vector.shape_cast %22 : vector<8x256xf32> to vector<1x8x256xf32>
    tpu.vector_store %arg12[%c0_25, %c0_26, %c0_27], %38 {strides = array<i32>} : memref<1x24x256xf32, #tpu.memory_space<vmem>>, vector<1x8x256xf32>,
    %c0_28 = arith.constant 0 : index
    %c8 = arith.constant 8 : index
    %c0_29 = arith.constant 0 : index
    %39 = vector.load %arg12[%c0_28, %c8, %c0_29] : memref<1x24x256xf32, #tpu.memory_space<vmem>>, vector<1x8x256xf32>
    %40 = vector.shape_cast %39 : vector<1x8x256xf32> to vector<8x256xf32>
    %41 = vector.shape_cast %24 : vector<8x256xf32> to vector<1x8x256xf32>
    tpu.vector_store %arg12[%c0_28, %c8, %c0_29], %41 {strides = array<i32>} : memref<1x24x256xf32, #tpu.memory_space<vmem>>, vector<1x8x256xf32>,
    %c0_30 = arith.constant 0 : index
    %c16 = arith.constant 16 : index
    %c0_31 = arith.constant 0 : index
    %42 = vector.load %arg12[%c0_30, %c16, %c0_31] : memref<1x24x256xf32, #tpu.memory_space<vmem>>, vector<1x8x256xf32>
    %43 = vector.shape_cast %42 : vector<1x8x256xf32> to vector<8x256xf32>
    %44 = vector.shape_cast %35 : vector<8x256xf32> to vector<1x8x256xf32>
    tpu.vector_store %arg12[%c0_30, %c16, %c0_31], %44 {strides = array<i32>} : memref<1x24x256xf32, #tpu.memory_space<vmem>>, vector<1x8x256xf32>,
    return
  }
  func.func @transform_0(%arg0: i32, %arg1: i32) -> (i32, i32, i32) {
    %c0_i32 = arith.constant 0 : i32
    %c0_i32_0 = arith.constant 0 : i32
    return %arg0, %c0_i32, %arg1 : i32, i32, i32
  }
  func.func @transform_1(%arg0: i32, %arg1: i32) -> (i32, i32) {
    %c0_i32 = arith.constant 0 : i32
    %c0_i32_0 = arith.constant 0 : i32
    %c0_i32_1 = arith.constant 0 : i32
    return %c0_i32, %c0_i32_0 : i32, i32
  }
  func.func @transform_2(%arg0: i32, %arg1: i32) -> (i32, i32) {
    %c0_i32 = arith.constant 0 : i32
    %c0_i32_0 = arith.constant 0 : i32
    %c0_i32_1 = arith.constant 0 : i32
    return %c0_i32, %c0_i32_0 : i32, i32
  }
  func.func @transform_3(%arg0: i32, %arg1: i32) -> (i32, i32) {
    %c0_i32 = arith.constant 0 : i32
    %c0_i32_0 = arith.constant 0 : i32
    %c0_i32_1 = arith.constant 0 : i32
    return %c0_i32, %c0_i32_0 : i32, i32
  }
  func.func @transform_4(%arg0: i32, %arg1: i32) -> (i32, i32) {
    %c0_i32 = arith.constant 0 : i32
    %c0_i32_0 = arith.constant 0 : i32
    %c0_i32_1 = arith.constant 0 : i32
    return %c0_i32, %c0_i32_0 : i32, i32
  }
  func.func @transform_5(%arg0: i32, %arg1: i32) -> (i32, i32) {
    %c0_i32 = arith.constant 0 : i32
    %c0_i32_0 = arith.constant 0 : i32
    %c0_i32_1 = arith.constant 0 : i32
    return %c0_i32, %c0_i32_0 : i32, i32
  }
  func.func @transform_6(%arg0: i32, %arg1: i32) -> (i32, i32) {
    %c0_i32 = arith.constant 0 : i32
    %c0_i32_0 = arith.constant 0 : i32
    %c0_i32_1 = arith.constant 0 : i32
    return %c0_i32, %c0_i32_0 : i32, i32
  }
  func.func @transform_7(%arg0: i32, %arg1: i32) -> (i32, i32) {
    %c0_i32 = arith.constant 0 : i32
    %c0_i32_0 = arith.constant 0 : i32
    %c0_i32_1 = arith.constant 0 : i32
    return %c0_i32, %c0_i32_0 : i32, i32
  }
  func.func @transform_8(%arg0: i32, %arg1: i32) -> (i32, i32) {
    %c0_i32 = arith.constant 0 : i32
    %c0_i32_0 = arith.constant 0 : i32
    %c0_i32_1 = arith.constant 0 : i32
    return %c0_i32, %c0_i32_0 : i32, i32
  }
  func.func @transform_9(%arg0: i32, %arg1: i32) -> (i32, i32) {
    %c0_i32 = arith.constant 0 : i32
    %c0_i32_0 = arith.constant 0 : i32
    %c0_i32_1 = arith.constant 0 : i32
    return %c0_i32, %c0_i32_0 : i32, i32
  }
  func.func @transform_10(%arg0: i32, %arg1: i32) -> (i32, i32, i32) {
    %c0_i32 = arith.constant 0 : i32
    %c0_i32_0 = arith.constant 0 : i32
    return %arg0, %c0_i32, %arg1 : i32, i32, i32
  }
}

</mosaic_0001>

<bundles_post_ra>
// kernel: cell_forward.1
= control target key start
LH: loop header
LB: loop body
LE: loop exit
PB: predicated region body
PF: predicated region fallthrough
CT: control target
= control target key end

     0   :  { %s849_s13 = smov 0   ;;  %s851_s14 = smov 0   ;;  %s936_s0 = inlined_call_operand.vmem [shape: f32[2,4,256], index: 0, kind: input, shape index: {}]   ;;  %s937_s1 = inlined_call_operand.vmem [shape: f32[8,4], index: 1, kind: input, shape index: {}]   ;;  %s938_s2 = inlined_call_operand.vmem [shape: f32[8,1], index: 2, kind: input, shape index: {}]   ;;  %s939_s3 = inlined_call_operand.vmem [shape: f32[8,1], index: 3, kind: input, shape index: {}]   ;;  %s940_s4 = inlined_call_operand.vmem [shape: f32[16,8], index: 4, kind: input, shape index: {}]   ;;  %s941_s5 = inlined_call_operand.vmem [shape: f32[16,1], index: 5, kind: input, shape index: {}]   ;;  %s942_s6 = inlined_call_operand.vmem [shape: f32[16,1], index: 6, kind: input, shape index: {}]   ;;  %s943_s7 = inlined_call_operand.vmem [shape: f32[8,8], index: 7, kind: input, shape index: {}]   ;;  %s944_s8 = inlined_call_operand.vmem [shape: f32[8,1], index: 8, kind: input, shape index: {}]   ;;  %s945_s9 = inlined_call_operand.vmem [shape: f32[8,1], index: 9, kind: input, shape index: {}]   ;;  %s946_s10 = inlined_call_operand.vmem [shape: f32[2,24,256], index: 10, kind: output, shape index: {}]  }
   0x1   :  { %s853_s15 = smov 0  }
   0x2 LB: > { %s32_s16 = sadd.s32 1, %s787_s14  ;;  %p723_p0 = scmp.ge.s32.totalorder %s791_s15, 1  ;;  %s791_s15 = sphi %s853_s15, %s20_s15   ;;  %s787_s14 = sphi %s851_s14, %s948_s14   ;;  %s783_s13 = sphi %s849_s13, %s947_s13  }
   0x3   : > { %p34_p1 = scmp.ge.s32.totalorder %s32_s16, 2  ;;  %p333_p2 = scmp.lt.s32.totalorder %s791_s15, 3 }
   0x5   : > { %s950_s16 = smov (%p34_p1, %s32_s16), 0  ;;  %p334_p3 = pnand %p723_p0, %p333_p2 }
   0x6   : > { %p380_p4 = scmp.lt.s32.totalorder (!%p334_p3), %s783_s13, 1 }
   0x7   : > { %337 = sbr.rel (%p334_p3) target bundleno = 433 (0x1b1), region = 60 }
   0xc   : > { %v455_v0 = vld [vmem:[%s938_s2] sm:$0xff]  ;;  %v793_v1 = vmov 0   ;;  %s952_s13 = smov (!%p380_p4, %s783_s13), 1  ;;  %vm410_vm0 = vcmask 1043456   ;;  %vm406_vm1 = vcmask 31744   ;;  %v529_v12 = vld [vmem:[%s941_s5 + $0x8] sm:$0xff] }
   0xd   : > { %766 = vset.pattern.permute.xlu0 %v793_v1  ;;  %767 = vset.pattern.permute.xlu1 %v793_v1  ;;  %s739_s19 = sshll.u32 %s952_s13, 3  ;;  %v463_v3 = vld [vmem:[%s939_s3] sm:$0xff]  ;;  %v545_v13 = vld [vmem:[%s942_s6 + $0x8] sm:$0xff]  ;;  %vm475_vm2 = vcmask 64512   ;;  %s740_s27 = smul.u32 48, %s952_s13 }
   0xe   : > { %458 = vperm.xlu0 %766, %v455_v0   ;;  %768 = vset.pattern.permute.xlu2 %v793_v1  ;;  %s387_s22 = scalar_lea.vmem %s936_s0, %s739_s19  ;;  %v400_v5 = vld [vmem:[%s937_s1] sm:$0xff]  ;;  %v472_v25 = vld [vmem:[%s940_s4 + $0x8] sm:$0xff] }
   0xf   : > { %v399_v2 = vld [vmem:[%s387_s22] sm:$0xff]  ;;  %537 = vperm.xlu2 %768, %v529_v12   ;;  %s914_s30 = scalar_lea.vmem %s946_s10, %s740_s27 }
  0x10   : > { %v401_v4 = vmax.f32 %v399_v2, 0.0  ;;  %v608_v6 = vld [vmem:[%s944_s8] sm:$0xff] }
  0x11   : > { %v528_v9 = vld [vmem:[%s941_s5] sm:$0xff] }
  0x12   : > { %403 = vst [vmem:[#allocation1] ss:$2 sm:$0xff] %v401_v4  ;;  %532 = vperm.xlu1 %767, %v528_v9   ;;  %v544_v10 = vld [vmem:[%s942_s6] sm:$0xff] }
  0x13   : > { %v616_v11 = vld [vmem:[%s945_s9] sm:$0xff] }
  0x14   : > { %v471_v24 = vld [vmem:[%s940_s4] sm:$0xff] }
  0x15   : > { %v562_v37 = vld [vmem:[%s943_s7] sm:$0xff] }
  0x16   : > { %466 = vperm.xlu0 %766, %v463_v3  }
  0x17   : > { %553 = vperm.xlu2 %768, %v545_v13  }
  0x19   : > { %v404_v7 = vld.sshfl [vmem:[#allocation1] sm:$0xff pattern:$0x75316420]  ;;  %v405_v8 = vld.sshfl [vmem:[#allocation1 + $0x8] sm:$0xff pattern:$0x75316420] }
  0x1a   : > { %727 = vmatpush.msk.msra.mxu0 %vm410_vm0, %v404_v7  ;;  %729 = vmatpush.msk.msra.mxu1 %vm410_vm0, %v405_v8 }
  0x1b   : > { %728 = vmatmul.msk.f32.vlgmr.msra.gmra.mxu0 %vm406_vm1, %v400_v5  ;;  %730 = vmatmul.msk.f32.vlgmr.msra.gmra.mxu1 %vm406_vm1, %v400_v5 }
  0x1c   : > { %548 = vperm.xlu1 %767, %v544_v10  }
  0x1e   : > { %611 = vperm.xlu0 %766, %v608_v6  }
  0x24   : > { %619 = vperm.xlu1 %767, %v616_v11  }
  0x69   : > { %v538_v27 = vpop.permute.xlu2 %537 }
  0x71   : > { %v554_v38 = vpop.permute.xlu2 %553 }
  0x80   : > { %v459_v14 = vpop.permute.xlu0 %458 }
  0x84   : > { %v533_v26 = vpop.permute.xlu1 %532 }
  0x88   : > { %v467_v19 = vpop.permute.xlu0 %466 }
  0x8e   : > { %v549_v32 = vpop.permute.xlu1 %548 }
  0x90   : > { %v612_v47 = vpop.permute.xlu0 %611 }
  0x96   : > { %v620_v52 = vpop.permute.xlu1 %619 }
  0x98   : > { %v432_v15 = vpop.f32.mrf.mxu0  ;;  %v452_v16 = vpop.f32.mrf.mxu1 }
  0x99   : > { %v461_v17 = vmul.f32 %v459_v14, %v432_v15  ;;  %v462_v18 = vmul.f32 %v459_v14, %v452_v16 }
  0x9b   : > { %v469_v20 = vadd.f32 %v467_v19, %v461_v17  ;;  %v470_v21 = vadd.f32 %v467_v19, %v462_v18 }
  0x9d   : > { %v473_v22 = vmax.f32 %v469_v20, 0.0  ;;  %v474_v23 = vmax.f32 %v470_v21, 0.0 }
  0x9f   : > { %497 = vmatpush.msra.mxu2 %v473_v22  ;;  %520 = vmatpush.msra.mxu3 %v474_v23 }
  0xa0   : > { %731 = vmatmul.msk.f32.vlgmr.msra.gmra.mxu2 %vm475_vm2, %v471_v24  ;;  %733 = vmatmul.msk.f32.vlgmr.msra.gmra.mxu3 %vm475_vm2, %v471_v24 }
  0xa8   : > { %732 = vmatmul.msk.f32.gmra.mxu2 %vm475_vm2, %v472_v25  ;;  %734 = vmatmul.msk.f32.gmra.mxu3 %vm475_vm2, %v472_v25 }
 0x123   : > { %v499_v28 = vpop.f32.mrf.mxu2  ;;  %v522_v29 = vpop.f32.mrf.mxu3 }
 0x124   : > { %v540_v30 = vmul.f32 %v533_v26, %v499_v28  ;;  %v541_v31 = vmul.f32 %v533_v26, %v522_v29 }
 0x126   : > { %v556_v33 = vadd.f32 %v549_v32, %v540_v30  ;;  %v557_v34 = vadd.f32 %v549_v32, %v541_v31 }
 0x128   : > { %626 = vst [vmem:[%s914_s30] sm:$0xff] %v556_v33  ;;  %v563_v35 = vmax.f32 %v556_v33, 0.0  ;;  %v564_v36 = vmax.f32 %v557_v34, 0.0 }
 0x129   : > { %627 = vst [vmem:[%s914_s30 + $0x8] sm:$0xff] %v557_v34 }
 0x12a   : > { %583 = vmatpush.msrb.mxu0 %v563_v35  ;;  %603 = vmatpush.msrb.mxu1 %v564_v36 }
 0x12b   : > { %v502_v39 = vpop.f32.mrf.mxu2  ;;  %v525_v40 = vpop.f32.mrf.mxu3  ;;  %735 = vmatmul.msk.f32.vlgmr.msrb.gmra.mxu0 %vm475_vm2, %v562_v37  ;;  %736 = vmatmul.msk.f32.vlgmr.msrb.gmra.mxu1 %vm475_vm2, %v562_v37 }
 0x12c   : > { %v542_v41 = vmul.f32 %v538_v27, %v502_v39  ;;  %v543_v42 = vmul.f32 %v538_v27, %v525_v40 }
 0x12e   : > { %v558_v43 = vadd.f32 %v554_v38, %v542_v41  ;;  %v559_v44 = vadd.f32 %v554_v38, %v543_v42 }
 0x130   : > { %v560_v45 = vadd.f32 %v558_v43, %v469_v20  ;;  %v561_v46 = vadd.f32 %v559_v44, %v470_v21 }
 0x132   : > { %628 = vst [vmem:[%s914_s30 + $0x10] sm:$0xff] %v560_v45 }
 0x133   : > { %629 = vst [vmem:[%s914_s30 + $0x18] sm:$0xff] %v561_v46 }
 0x1a8   : > { %v585_v48 = vpop.f32.mrf.mxu0  ;;  %v605_v49 = vpop.f32.mrf.mxu1 }
 0x1a9   : > { %v614_v50 = vmul.f32 %v612_v47, %v585_v48  ;;  %v615_v51 = vmul.f32 %v612_v47, %v605_v49 }
 0x1ab   : > { %v622_v53 = vadd.f32 %v620_v52, %v614_v50  ;;  %v623_v54 = vadd.f32 %v620_v52, %v615_v51 }
 0x1ad   : > { %v624_v55 = vadd.f32 %v622_v53, %v560_v45  ;;  %v625_v56 = vadd.f32 %v623_v54, %v561_v46 }
 0x1af   : > { %630 = vst [vmem:[%s914_s30 + $0x20] sm:$0xff] %v624_v55 }
 0x1b0   : > { %631 = vst [vmem:[%s914_s30 + $0x28] sm:$0xff] %v625_v56 }
 0x1b1 PF: > { %s20_s15 = sadd.s32 1, %s791_s15   ;;  %s947_s13 = smov %s787_s14 }
 0x1b2   : > { %p17_p5 = scmp.ge.s32.totalorder %s20_s15, 4   ;;  %s948_s14 = smov %s950_s16 }
 0x1b4   :  { %19 = sbr.rel (!%p17_p5) target bundleno = 2 (0x2), region = 90 }

</bundles_post_ra>
